<compile_context>
chip_gen: v7x
topology: tpu7x:2x2x1
jax: 0.10.0
libtpu: 0.0.40
codegen_flags: <defaults>
</compile_context>

<pallas_src>
import functools

import jax
import jax.numpy as jnp
import numpy as np
from jax import lax
from jax.experimental import pallas as pl
from jax.experimental.pallas import tpu as pltpu


def _sublayer_connection_kernel(seed_ref, x_ref, gamma_ref, beta_ref, w_ref, b_ref,
                                out_ref, *, dropout_p, eps, inv_d, row_tile):
    x32 = x_ref[...].astype(jnp.float32)                          # (TR, D)

    # ---- LayerNorm stats: two independent XLU reductions (sum, sum of squares) ----
    mean = jnp.sum(x32, axis=-1, keepdims=True) * inv_d
    ex2 = jnp.sum(x32 * x32, axis=-1, keepdims=True) * inv_d
    var = ex2 - mean * mean
    inv = lax.rsqrt(var + eps)

    # Fused normalize: the centered copy dies immediately, shortening live ranges.
    h = (x32 - mean) * (inv * gamma_ref[...].astype(jnp.float32)) \
        + beta_ref[...].astype(jnp.float32)

    # ---- sublayer(norm(x)): Linear(D, D) on the MXU, operands in W's dtype, f32 acc ----
    w = w_ref[...]
    s = jnp.dot(h.astype(w.dtype), w, preferred_element_type=jnp.float32)
    s = s + b_ref[...].astype(jnp.float32)

    # ---- dropout (inverted-dropout training semantics; identity when p == 0) ----
    if dropout_p > 0.0:
        tr, d = s.shape
        # Counter-based PRNG: murmur3 fmix32 over the *global* element index.
        row = (lax.broadcasted_iota(jnp.int32, s.shape, 0).astype(jnp.uint32)
               + (pl.program_id(0) * row_tile).astype(jnp.uint32))
        col = lax.broadcasted_iota(jnp.int32, s.shape, 1).astype(jnp.uint32)
        z = row * jnp.uint32(d) + col
        # Mix the seed with a large odd constant -> no (seed, tile) collisions.
        z = z ^ (seed_ref[0].astype(jnp.uint32) * jnp.uint32(0x9E3779B1))
        z = z ^ (z >> 16)
        z = z * jnp.uint32(0x7FEB352D)
        z = z ^ (z >> 15)
        z = z * jnp.uint32(0x846CA68B)
        z = z ^ (z >> 16)
        # NOTE: threshold clamp makes p slightly inexact only as p -> 1.0.
        thresh = np.uint32(min(int(dropout_p * 4294967296.0), 4294967295))
        s = jnp.where(z >= thresh,
                      s * np.float32(1.0 / (1.0 - dropout_p)),
                      np.float32(0.0))

    # ---- residual add; re-read x from VMEM (already resident) after the dot ----
    out_ref[...] = (x_ref[...].astype(jnp.float32) + s).astype(out_ref.dtype)


def _resident_spec(block_shape):
    """Grid-invariant operand: keep it resident with a single VMEM buffer."""
    idx = lambda i, s_ref: (0, 0)
    try:
        return pl.BlockSpec(block_shape, idx, pipeline_mode=pl.Buffered(buffer_count=1))
    except (AttributeError, TypeError):
        # Older jax: fall back to default (double-buffered) behaviour.
        return pl.BlockSpec(block_shape, idx)


def sublayer_connection(x, gamma, beta, w, b, *, dropout_p=0.0, seed=0,
                        eps=1e-5, row_tile=256):
    """x: [..., D]; gamma/beta/b: [D]; w: [D, D]. Returns same shape AND dtype as x."""
    orig_shape = x.shape
    D = orig_shape[-1]

    x2 = x.reshape(-1, D)                       # keep native dtype (bf16 stays bf16)
    N = x2.shape[0]

    # Row tile: multiple of 8 (sublane), clamped so tiny inputs use one small block.
    row_tile = max(8, (int(row_tile) // 8) * 8)
    rt = min(row_tile, ((N + 7) // 8) * 8)
    n_tiles = pl.cdiv(N, rt)                    # ragged last block handled by Pallas

    gamma2 = gamma.reshape(1, D)
    beta2 = beta.reshape(1, D)
    b2 = b.reshape(1, D)
    seed_arr = jnp.asarray([seed], dtype=jnp.int32)

    kernel = functools.partial(_sublayer_connection_kernel,
                               dropout_p=float(dropout_p), eps=float(eps),
                               inv_d=float(1.0 / D), row_tile=int(rt))

    grid_spec = pltpu.PrefetchScalarGridSpec(
        num_scalar_prefetch=1,                                  # dropout seed in SMEM
        grid=(n_tiles,),
        in_specs=[
            pl.BlockSpec((rt, D), lambda i, s_ref: (i, 0)),     # x tile (pipelined)
            _resident_spec((1, D)),                             # gamma (resident)
            _resident_spec((1, D)),                             # beta  (resident)
            _resident_spec((D, D)),                             # W     (resident)
            _resident_spec((1, D)),                             # bias  (resident)
        ],
        out_specs=pl.BlockSpec((rt, D), lambda i, s_ref: (i, 0)),
    )

    # VMEM budget: 2 in + 2 out x-tiles + (worst case double-buffered) W, with margin,
    # clamped to a range that is safe on v5e/v6e (128 MiB) and v7x (64 MiB physical).
    xb = jnp.dtype(x.dtype).itemsize
    wb = jnp.dtype(w.dtype).itemsize
    est = 4 * rt * D * xb + 2 * D * D * wb + 8 * D * 4 + (1 << 16)
    vmem_limit = int(min(max(2 * est, 32 * 1024 * 1024), 48 * 1024 * 1024))

    out = pl.pallas_call(
        kernel,
        out_shape=jax.ShapeDtypeStruct((N, D), x.dtype),        # dtype-preserving output
        grid_spec=grid_spec,
        compiler_params=pltpu.CompilerParams(
            dimension_semantics=("parallel",),                  # megacore split on v7x
            vmem_limit_bytes=vmem_limit,
        ),
    )(seed_arr, x2, gamma2, beta2, w, b2)

    return out.reshape(orig_shape)


if __name__ == "__main__":
    key = jax.random.PRNGKey(0)
    B, S, D = 2, 8, 128                      # lane-dense hidden dim, small shapes
    k1, k2, k3, k4, k5 = jax.random.split(key, 5)

    x = jax.random.normal(k1, (B, S, D), dtype=jnp.float32)
    gamma = 1.0 + 0.1 * jax.random.normal(k2, (D,), dtype=jnp.float32)
    beta = 0.1 * jax.random.normal(k3, (D,), dtype=jnp.float32)
    w = 0.05 * jax.random.normal(k4, (D, D), dtype=jnp.float32)
    b = 0.05 * jax.random.normal(k5, (D,), dtype=jnp.float32)

    def ref(x, gamma, beta, w, b, eps=1e-5):
        mean = x.mean(-1, keepdims=True)
        var = ((x - mean) ** 2).mean(-1, keepdims=True)
        h = (x - mean) / jnp.sqrt(var + eps) * gamma + beta
        return x + h @ w + b

    # 1) Eval mode (dropout = identity), f32 path.
    out_f = sublayer_connection(x, gamma, beta, w, b, dropout_p=0.0)
    jax.block_until_ready(out_f)
    expected = ref(x, gamma, beta, w, b)
    np.testing.assert_allclose(np.asarray(out_f), np.asarray(expected),
                               rtol=2e-2, atol=2e-2)
    assert out_f.dtype == x.dtype

    # 2) Eval mode, native-bf16 I/O fast path (halves HBM traffic, bf16 MXU operands).
    xb16 = x.astype(jnp.bfloat16)
    out_b = sublayer_connection(xb16, gamma.astype(jnp.bfloat16),
                                beta.astype(jnp.bfloat16), w.astype(jnp.bfloat16),
                                b.astype(jnp.bfloat16), dropout_p=0.0)
    jax.block_until_ready(out_b)
    assert out_b.dtype == jnp.bfloat16
    exp_b = ref(xb16.astype(jnp.float32),
                gamma.astype(jnp.bfloat16).astype(jnp.float32),
                beta.astype(jnp.bfloat16).astype(jnp.float32),
                w.astype(jnp.bfloat16).astype(jnp.float32),
                b.astype(jnp.bfloat16).astype(jnp.float32))
    np.testing.assert_allclose(np.asarray(out_b.astype(jnp.float32)),
                               np.asarray(exp_b), rtol=5e-2, atol=5e-2)

    # 3) Training-mode dropout: every element is either the bare residual (dropped)
    #    or residual + sublayer/(1-p) (kept, inverted-dropout scaling).
    p = 0.5
    out_d = sublayer_connection(x, gamma, beta, w, b, dropout_p=p, seed=123)
    jax.block_until_ready(out_d)
    s_ref = np.asarray(expected - x)
    delta = np.asarray(out_d) - np.asarray(x)
    kept = np.isclose(delta, s_ref / (1.0 - p), rtol=5e-2, atol=5e-2)
    dropped = np.isclose(delta, 0.0, atol=1e-6)
    assert np.all(kept | dropped), "dropout output neither kept nor dropped"
    drop_frac = dropped.mean()
    assert 0.2 < drop_frac < 0.8, f"dropout mask degenerate (drop_frac={drop_frac})"

    print("KERNEL_OK")
</pallas_src>

<mosaic_0001>
module attributes {stable_mosaic.version = 11 : i64} {
  func.func @_sublayer_connection_kernel(%arg0: i32, %arg1: memref<1xi32, #tpu.memory_space<smem>>, %arg2: memref<16x128xf32, #tpu.memory_space<vmem>>, %arg3: memref<1x128xf32, #tpu.memory_space<vmem>>, %arg4: memref<1x128xf32, #tpu.memory_space<vmem>>, %arg5: memref<128x128xf32, #tpu.memory_space<vmem>>, %arg6: memref<1x128xf32, #tpu.memory_space<vmem>>, %arg7: memref<16x128xf32, #tpu.memory_space<vmem>>) attributes {dimension_semantics = [#tpu.dimension_semantics<parallel>], iteration_bounds = array<i64: 1>, scalar_prefetch = 1 : i64, scratch_operands = 0 : i64, tpu.core_type = #tpu.core_type<tc>, window_params = [{transform_indices = @transform_0, window_bounds = array<i64: 16, 128>}, {pipeline_mode = #tpu.pipeline_mode<synchronous>, transform_indices = @transform_1, window_bounds = array<i64: 1, 128>}, {pipeline_mode = #tpu.pipeline_mode<synchronous>, transform_indices = @transform_2, window_bounds = array<i64: 1, 128>}, {pipeline_mode = #tpu.pipeline_mode<synchronous>, transform_indices = @transform_3, window_bounds = array<i64: 128, 128>}, {pipeline_mode = #tpu.pipeline_mode<synchronous>, transform_indices = @transform_4, window_bounds = array<i64: 1, 128>}, {transform_indices = @transform_5, window_bounds = array<i64: 16, 128>}]} {
    %c0 = arith.constant 0 : index
    %c0_0 = arith.constant 0 : index
    %0 = vector.load %arg2[%c0, %c0_0] : memref<16x128xf32, #tpu.memory_space<vmem>>, vector<16x128xf32>
    %cst = arith.constant dense<0.000000e+00> : vector<16xf32>
    %1 = vector.multi_reduction <add>, %0, %cst [1] : vector<16x128xf32> to vector<16xf32>
    %2 = vector.shape_cast %1 : vector<16xf32> to vector<16x1xf32>
    %cst_1 = arith.constant 7.812500e-03 : f32
    %3 = vector.broadcast %cst_1 : f32 to vector<16x1xf32>
    %4 = arith.mulf %2, %3 : vector<16x1xf32>
    %5 = arith.mulf %0, %0 : vector<16x128xf32>
    %cst_2 = arith.constant dense<0.000000e+00> : vector<16xf32>
    %6 = vector.multi_reduction <add>, %5, %cst_2 [1] : vector<16x128xf32> to vector<16xf32>
    %7 = vector.shape_cast %6 : vector<16xf32> to vector<16x1xf32>
    %cst_3 = arith.constant 7.812500e-03 : f32
    %8 = vector.broadcast %cst_3 : f32 to vector<16x1xf32>
    %9 = arith.mulf %7, %8 : vector<16x1xf32>
    %10 = arith.mulf %4, %4 : vector<16x1xf32>
    %11 = arith.subf %9, %10 : vector<16x1xf32>
    %cst_4 = arith.constant 9.99999974E-6 : f32
    %12 = vector.broadcast %cst_4 : f32 to vector<16x1xf32>
    %13 = arith.addf %11, %12 : vector<16x1xf32>
    %14 = math.rsqrt %13 : vector<16x1xf32>
    %15 = vector.broadcast %4 : vector<16x1xf32> to vector<16x128xf32>
    %16 = arith.subf %0, %15 : vector<16x128xf32>
    %c0_5 = arith.constant 0 : index
    %c0_6 = arith.constant 0 : index
    %17 = vector.load %arg3[%c0_5, %c0_6] : memref<1x128xf32, #tpu.memory_space<vmem>>, vector<1x128xf32>
    %18 = vector.broadcast %14 : vector<16x1xf32> to vector<16x128xf32>
    %19 = vector.broadcast %17 : vector<1x128xf32> to vector<16x128xf32>
    %20 = arith.mulf %18, %19 : vector<16x128xf32>
    %21 = arith.mulf %16, %20 : vector<16x128xf32>
    %c0_7 = arith.constant 0 : index
    %c0_8 = arith.constant 0 : index
    %22 = vector.load %arg4[%c0_7, %c0_8] : memref<1x128xf32, #tpu.memory_space<vmem>>, vector<1x128xf32>
    %23 = vector.broadcast %22 : vector<1x128xf32> to vector<16x128xf32>
    %24 = arith.addf %21, %23 : vector<16x128xf32>
    %c0_9 = arith.constant 0 : index
    %c0_10 = arith.constant 0 : index
    %25 = vector.load %arg5[%c0_9, %c0_10] : memref<128x128xf32, #tpu.memory_space<vmem>>, vector<128x128xf32>
    %cst_11 = arith.constant dense<0.000000e+00> : vector<16x128xf32>
    %26 = tpu.matmul %24, %25, %cst_11 {dimension_numbers = #tpu.dot_dimension_numbers<[1], [0], [0], [1], [0, 0, 1, 1], [], []>} : vector<16x128xf32>, vector<128x128xf32>, vector<16x128xf32> -> vector<16x128xf32>
    %c0_12 = arith.constant 0 : index
    %c0_13 = arith.constant 0 : index
    %27 = vector.load %arg6[%c0_12, %c0_13] : memref<1x128xf32, #tpu.memory_space<vmem>>, vector<1x128xf32>
    %28 = vector.broadcast %27 : vector<1x128xf32> to vector<16x128xf32>
    %29 = arith.addf %26, %28 : vector<16x128xf32>
    %c0_14 = arith.constant 0 : index
    %c0_15 = arith.constant 0 : index
    %30 = vector.load %arg2[%c0_14, %c0_15] : memref<16x128xf32, #tpu.memory_space<vmem>>, vector<16x128xf32>
    %31 = arith.addf %30, %29 : vector<16x128xf32>
    %c0_16 = arith.constant 0 : index
    %c0_17 = arith.constant 0 : index
    %32 = vector.load %arg7[%c0_16, %c0_17] : memref<16x128xf32, #tpu.memory_space<vmem>>, vector<16x128xf32>
    tpu.vector_store %arg7[%c0_16, %c0_17], %31 {strides = array<i32>} : memref<16x128xf32, #tpu.memory_space<vmem>>, vector<16x128xf32>,
    return
  }
  func.func @transform_0(%arg0: i32, %arg1: memref<1xi32, #tpu.memory_space<smem>>) -> (i32, i32) {
    %c0_i32 = arith.constant 0 : i32
    %c0_i32_0 = arith.constant 0 : i32
    return %arg0, %c0_i32 : i32, i32
  }
  func.func @transform_1(%arg0: i32, %arg1: memref<1xi32, #tpu.memory_space<smem>>) -> (i32, i32) {
    %c0_i32 = arith.constant 0 : i32
    %c0_i32_0 = arith.constant 0 : i32
    %c0_i32_1 = arith.constant 0 : i32
    return %c0_i32, %c0_i32_0 : i32, i32
  }
  func.func @transform_2(%arg0: i32, %arg1: memref<1xi32, #tpu.memory_space<smem>>) -> (i32, i32) {
    %c0_i32 = arith.constant 0 : i32
    %c0_i32_0 = arith.constant 0 : i32
    %c0_i32_1 = arith.constant 0 : i32
    return %c0_i32, %c0_i32_0 : i32, i32
  }
  func.func @transform_3(%arg0: i32, %arg1: memref<1xi32, #tpu.memory_space<smem>>) -> (i32, i32) {
    %c0_i32 = arith.constant 0 : i32
    %c0_i32_0 = arith.constant 0 : i32
    %c0_i32_1 = arith.constant 0 : i32
    return %c0_i32, %c0_i32_0 : i32, i32
  }
  func.func @transform_4(%arg0: i32, %arg1: memref<1xi32, #tpu.memory_space<smem>>) -> (i32, i32) {
    %c0_i32 = arith.constant 0 : i32
    %c0_i32_0 = arith.constant 0 : i32
    %c0_i32_1 = arith.constant 0 : i32
    return %c0_i32, %c0_i32_0 : i32, i32
  }
  func.func @transform_5(%arg0: i32, %arg1: memref<1xi32, #tpu.memory_space<smem>>) -> (i32, i32) {
    %c0_i32 = arith.constant 0 : i32
    %c0_i32_0 = arith.constant 0 : i32
    return %arg0, %c0_i32 : i32, i32
  }
}

</mosaic_0001>

<bundles_post_ra>
// kernel: tpu_custom_call.1
= control target key start
LH: loop header
LB: loop body
LE: loop exit
PB: predicated region body
PF: predicated region fallthrough
CT: control target
= control target key end

     0   :  { %12 = vsyncpa [#allocation5], 0  ;;  %s494_s0 = inlined_call_operand.<no memory space> [shape: s32[1], index: 0, kind: input, shape index: {}]   ;;  %s495_s1 = inlined_call_operand.hbm [shape: f32[16,128], index: 1, kind: input, shape index: {}]   ;;  %s496_s2 = inlined_call_operand.vmem [shape: f32[1,128], index: 2, kind: input, shape index: {}]   ;;  %s497_s3 = inlined_call_operand.vmem [shape: f32[1,128], index: 3, kind: input, shape index: {}]   ;;  %s498_s4 = inlined_call_operand.hbm [shape: f32[128,128], index: 4, kind: input, shape index: {}]   ;;  %s499_s5 = inlined_call_operand.vmem [shape: f32[1,128], index: 5, kind: input, shape index: {}]   ;;  %s500_s6 = inlined_call_operand.hbm [shape: f32[16,128], index: 6, kind: output, shape index: {}]  }
   0x1   :  { %13 = vsyncpa [#allocation8], 0 }
   0x2   :  { %14 = vsyncpa [#allocation6], 0  ;;  %s386_s0 = smov [#allocation4]   ;;  %s314_s24 = scalar_lea.hbm %s495_s1, 256 }
   0x3   :  { %s20_s21 = sshll.u32 %s386_s0, 4  ;;  %p315_p0 = scmp.ne.s32.totalorder %s495_s1, %s314_s24  ;;  %s21_s21 = int_to_ptr.vmem [resolvable:$true] %s20_s21 }
   0x4   :  { %p318_p1 = scmp.lt.u32.totalorder %s314_s24, %s495_s1 }
   0x6   :  { %p320_p2 = pnand %p318_p1, %p315_p0 }
   0x8   :  { %323 = shalt.err (!%p320_p2)
}
   0x9   :  { %s324_s29 = scalar_lea.vmem %s21_s21, 256  ;;  %p329_p4 = scmp.lt.s32.totalorder %s21_s21, %s21_s21 }
   0xa   :  { %p325_p3 = scmp.ne.s32.totalorder %s21_s21, %s324_s29  ;;  %p330_p5 = scmp.lt.s32.totalorder %s324_s29, %s324_s29 }
   0xc   :  { %p331_p6 = por %p330_p5, %p329_p4 }
   0xe   :  { %p332_p7 = pnand %p331_p6, %p325_p3 }
  0x10   :  { %335 = shalt.err (!%p332_p7)
}
  0x11   :  { %s387_s30 = smov 128   ;;  %s388_s7 = smov 8  }
  0x12   :  { %26 = dma.hbm_to_vmem [thread:$0]  %s495_s1, 256, %s21_s21, [#allocation5], %s387_s30, %s387_s30, %s388_s7  }
  0x13   :  { %s389_s10 = smov [#allocation7]   ;;  %s336_s14 = scalar_lea.hbm %s498_s4, 2048 }
  0x14   :  { %s36_s11 = sshll.u32 %s389_s10, 4  ;;  %p337_p8 = scmp.ne.s32.totalorder %s498_s4, %s336_s14  ;;  %s37_s11 = int_to_ptr.vmem [resolvable:$true] %s36_s11 }
  0x15   :  { %p340_p9 = scmp.lt.u32.totalorder %s336_s14, %s498_s4 }
  0x17   :  { %p342_p10 = pnand %p340_p9, %p337_p8 }
  0x19   :  { %345 = shalt.err (!%p342_p10)
}
  0x1a   :  { %s346_s19 = scalar_lea.vmem %s37_s11, 2048  ;;  %p351_p12 = scmp.lt.s32.totalorder %s37_s11, %s37_s11 }
  0x1b   :  { %p347_p11 = scmp.ne.s32.totalorder %s37_s11, %s346_s19  ;;  %p352_p13 = scmp.lt.s32.totalorder %s346_s19, %s346_s19 }
  0x1d   :  { %p353_p0 = por %p352_p13, %p351_p12 }
  0x1f   :  { %p354_p1 = pnand %p353_p0, %p347_p11 }
  0x21   :  { %357 = shalt.err (!%p354_p1)
}
  0x22   :  { %42 = dma.hbm_to_vmem [thread:$0]  %s498_s4, 2048, %s37_s11, [#allocation8], %s387_s30, %s387_s30, %s388_s7  }
  0x23   :  { %380 = dma.done.wait [#allocation5], 256  }
  0x24   :  { %381 = vsyncadd [#allocation5], 4294967040 }
  0x25   :  { %382 = dma.done.wait [#allocation8], 2048  }
  0x26   :  { %383 = vsyncadd [#allocation8], 4294965248  ;;  %v456_v0 = vld [vmem:[#allocation4] sm:$0xff]  ;;  %v458_v1 = vld [vmem:[#allocation4 + $0x8] sm:$0xff]  ;;  %s390_s24 = smov [#allocation9]  }
  0x27   :  { %v97_v2 = vld [vmem:[#allocation7] sm:$0xff]  ;;  %53 = vadd.xlane.f32.xlu0 %v456_v0  ;;  %v59_v3 = vmul.f32 %v456_v0, %v456_v0  ;;  %v98_v4 = vld [vmem:[#allocation7 + $0x8] sm:$0xff]  ;;  %v60_v6 = vmul.f32 %v458_v1, %v458_v1  ;;  %v99_v7 = vld [vmem:[#allocation7 + $0x10] sm:$0xff]  ;;  %s204_s25 = sshll.u32 %s390_s24, 4  ;;  %s205_s25 = int_to_ptr.vmem [resolvable:$true] %s204_s25 }
  0x28   :  { %v273_v5 = vpack.c.bf16 %v98_v4, %v97_v2  ;;  %v100_v8 = vld [vmem:[#allocation7 + $0x18] sm:$0xff]  ;;  %v101_v10 = vld [vmem:[#allocation7 + $0x20] sm:$0xff]  ;;  %v102_v11 = vld [vmem:[#allocation7 + $0x28] sm:$0xff]  ;;  %p363_p3 = scmp.lt.s32.totalorder %s205_s25, %s205_s25 }
  0x29   :  { %61 = vadd.xlane.f32.xlu1 %v59_v3  ;;  %v277_v9 = vpack.c.bf16 %v100_v8, %v99_v7  ;;  %v281_v12 = vpack.c.bf16 %v102_v11, %v101_v10  ;;  %v103_v13 = vld [vmem:[#allocation7 + $0x30] sm:$0xff]  ;;  %v104_v14 = vld [vmem:[#allocation7 + $0x38] sm:$0xff]  ;;  %v105_v16 = vld [vmem:[#allocation7 + $0x40] sm:$0xff] }
  0x2a   :  { %274 = vmatprep.subr.bf16.mxu0 %v273_v5  ;;  %v285_v15 = vpack.c.bf16 %v104_v14, %v103_v13  ;;  %v106_v17 = vld [vmem:[#allocation7 + $0x48] sm:$0xff]  ;;  %v107_v19 = vld [vmem:[#allocation7 + $0x50] sm:$0xff]  ;;  %v108_v20 = vld [vmem:[#allocation7 + $0x58] sm:$0xff] }
  0x2b   :  { %55 = vadd.xlane.f32.xlu0 %v458_v1  ;;  %276 = vmatpush3.bf16.msra.mxu0 %v273_v5  ;;  %v289_v18 = vpack.c.bf16 %v106_v17, %v105_v16  ;;  %v109_v21 = vld [vmem:[#allocation7 + $0x60] sm:$0xff]  ;;  %v293_v22 = vpack.c.bf16 %v108_v20, %v107_v19  ;;  %v110_v23 = vld [vmem:[#allocation7 + $0x68] sm:$0xff]  ;;  %v111_v25 = vld [vmem:[#allocation7 + $0x70] sm:$0xff] }
  0x2c   :  { %278 = vmatprep.subr.bf16.mxu0 %v277_v9  ;;  %v297_v24 = vpack.c.bf16 %v110_v23, %v109_v21  ;;  %v112_v26 = vld [vmem:[#allocation7 + $0x78] sm:$0xff]  ;;  %v217_v42 = vld [vmem:[%s496_s2] ss:$0 sm:$0xff] }
  0x2d   :  { %63 = vadd.xlane.f32.xlu1 %v60_v6  ;;  %v301_v27 = vpack.c.bf16 %v112_v26, %v111_v25  ;;  %v218_v46 = vld [vmem:[%s497_s3] ss:$0 sm:$0xff]  ;;  %s358_s3 = scalar_lea.vmem %s205_s25, 256 }
  0x2e   :  { %v219_v54 = vld [vmem:[%s499_s5] ss:$0 sm:$0xff]  ;;  %p359_p2 = scmp.ne.s32.totalorder %s205_s25, %s358_s3  ;;  %p364_p4 = scmp.lt.s32.totalorder %s358_s3, %s358_s3 }
  0x2f   :  { %280 = vmatpush3.bf16.msra.mxu0 %v277_v9 }
  0x30   :  { %282 = vmatprep.subr.bf16.mxu0 %v281_v12  ;;  %p365_p5 = por %p364_p4, %p363_p3 }
  0x32   :  { %p366_p6 = pnand %p365_p5, %p359_p2 }
  0x33   :  { %284 = vmatpush3.bf16.msra.mxu0 %v281_v12 }
  0x34   :  { %286 = vmatprep.subr.bf16.mxu0 %v285_v15 }
  0x37   :  { %288 = vmatpush3.bf16.msra.mxu0 %v285_v15 }
  0x38   :  { %290 = vmatprep.subr.bf16.mxu0 %v289_v18 }
  0x3b   :  { %292 = vmatpush3.bf16.msra.mxu0 %v289_v18 }
  0x3c   :  { %294 = vmatprep.subr.bf16.mxu0 %v293_v22 }
  0x3f   :  { %296 = vmatpush3.bf16.msra.mxu0 %v293_v22 }
  0x40   :  { %298 = vmatprep.subr.bf16.mxu0 %v297_v24 }
  0x43   :  { %300 = vmatpush3.bf16.msra.mxu0 %v297_v24 }
  0x44   :  { %302 = vmatprep.subr.bf16.mxu0 %v301_v27 }
  0x47   :  { %304 = vmatpush3.bf16.msra.mxu0 %v301_v27 }
  0xb4   :  { %v54_v28 = vpop.xlane.xlu0 %53 }
  0xb5   :  { %v57_v29 = vmul.f32 0.0078125, %v54_v28 }
  0xb6   :  { %v62_v30 = vpop.xlane.xlu1 %61 }
  0xb7   :  { %v67_v31 = vmul.f32 %v57_v29, %v57_v29  ;;  %v65_v32 = vmul.f32 0.0078125, %v62_v30  ;;  %v75_v44 = vsub.f32 %v456_v0, %v57_v29 }
  0xb8   :  { %v56_v33 = vpop.xlane.xlu0 %55 }
  0xb9   :  { %v69_v34 = vsub.f32 %v65_v32, %v67_v31  ;;  %v58_v35 = vmul.f32 0.0078125, %v56_v33 }
  0xba   :  { %v64_v36 = vpop.xlane.xlu1 %63 }
  0xbb   :  { %v71_v37 = vadd.f32 1e-05, %v69_v34  ;;  %v68_v38 = vmul.f32 %v58_v35, %v58_v35  ;;  %v66_v39 = vmul.f32 0.0078125, %v64_v36  ;;  %v76_v49 = vsub.f32 %v458_v1, %v58_v35 }
  0xbd   :  { %310 = vrsqrt.f32 %v71_v37  ;;  %v70_v40 = vsub.f32 %v66_v39, %v68_v38 }
  0xbf   :  { %v72_v41 = vadd.f32 1e-05, %v70_v40 }
  0xc1   :  { %312 = vrsqrt.f32 %v72_v41 }
  0xc7   :  { %v311_v43 = vpop.eup %310 }
  0xc8   :  { %v84_v45 = vmul.f32 %v311_v43, %v217_v42 }
  0xca   :  { %v86_v47 = vmul.f32 %v84_v45, %v75_v44 }
  0xcb   :  { %v313_v48 = vpop.eup %312 }
  0xcc   :  { %v85_v50 = vmul.f32 %v313_v48, %v217_v42  ;;  %v95_v51 = vadd.f32 %v218_v46, %v86_v47 }
  0xce   :  { %v87_v52 = vmul.f32 %v85_v50, %v76_v49  ;;  %270 = vmatprep.mubr.f32.mxu0 %v95_v51 }
  0xd0   :  { %v96_v53 = vadd.f32 %v218_v46, %v87_v52 }
  0xd2   :  { %271 = vmatmul.mubr.f32.vlgmr.msra.gmra.mrb[0].mxu0 %v96_v53 }
 0x1a5   :  { %v272_v55 = vpop.f32.mrb[0].mxu0 }
 0x1a6   :  { %v192_v56 = vadd.f32 %v272_v55, %v219_v54  ;;  %v186_v57 = vpop.f32.mrb[1].mxu0 }
 0x1a7   :  { %v187_v58 = vadd.f32 %v219_v54, %v186_v57 }
 0x1a8   :  { %v196_v59 = vadd.f32 %v192_v56, %v458_v1 }
 0x1a9   :  { %v195_v60 = vadd.f32 %v187_v58, %v456_v0 }
 0x1aa   :  { %198 = vst [vmem:[#allocation9 + $0x8] sm:$0xff] %v196_v59 }
 0x1ab   :  { %197 = vst [vmem:[#allocation9] sm:$0xff] %v195_v60 }
 0x1ac   :  { %369 = shalt.err (!%p366_p6)
}
 0x1ad   :  { %s370_s27 = scalar_lea.hbm %s500_s6, 256 }
 0x1ae   :  { %p371_p7 = scmp.ne.s32.totalorder %s500_s6, %s370_s27  ;;  %p374_p8 = scmp.lt.u32.totalorder %s370_s27, %s500_s6 }
 0x1b0   :  { %p376_p9 = pnand %p374_p8, %p371_p7 }
 0x1b2   :  { %379 = shalt.err (!%p376_p9)
}
 0x1b3   :  { %210 = dma.vmem_to_hbm [thread:$0]  %s205_s25, 256, %s500_s6, [#allocation6], %s387_s30, %s387_s30, %s388_s7  }
 0x1b4   :  { %384 = dma.done.wait [#allocation6], 256  }
 0x1b5   :  { %385 = vsyncadd [#allocation6], 4294967040 }
 0x1b6   :  { %214 = vsyncpa [#allocation5], 1 }
 0x1b7   :  { %215 = vsyncpa [#allocation8], 1 }
 0x1b8   :  { %216 = vsyncpa [#allocation6], 1 }

</bundles_post_ra>
